<compile_context>
chip_gen: v7x
topology: tpu7x:2x2x1
jax: 0.10.0
libtpu: 0.0.40
codegen_flags: <defaults>
</compile_context>

<pallas_src>
import functools

import jax
import jax.numpy as jnp
from jax import lax
from jax.experimental import pallas as pl
from jax.experimental.pallas import tpu as pltpu
import numpy as np

# ----------------------------- configuration ------------------------------
N_INPUT_DIMS = 3          # xyz coordinates
BASE_N_FREQS = 4          # base VanillaFrequency encoding (config['n_frequencies'])
COMPOSITE_N_FREQS = 2     # CompositeEncoding.n_frequencies (extra freq encoding)
INCLUDE_XYZ = True
XYZ_SCALE = 2.0           # as set in get_encoding()
XYZ_OFFSET = -1.0

# freq_bands = 2 ** linspace(0, N-1, N)  -> [1, 2, 4, ...] (exact powers of two)
BASE_FREQ_BANDS = tuple(float(2.0 ** i) for i in np.linspace(0.0, BASE_N_FREQS - 1, BASE_N_FREQS))
COMP_FREQ_BANDS = tuple(float(2.0 ** i) for i in np.linspace(0.0, COMPOSITE_N_FREQS - 1, COMPOSITE_N_FREQS))
MAX_N_FREQS = max(BASE_N_FREQS, COMPOSITE_N_FREQS)

N_OUT = (N_INPUT_DIMS if INCLUDE_XYZ else 0) \
        + N_INPUT_DIMS * 2 * COMPOSITE_N_FREQS \
        + N_INPUT_DIMS * 2 * BASE_N_FREQS              # 3 + 12 + 24 = 39
N_OUT_PAD = ((N_OUT + 7) // 8) * 8                     # sublane-aligned scratch rows (40)


# ------------------------------- kernel -----------------------------------
def composite_encoding_kernel(x_ref, o_ref, buf_ref):
    # x_ref:   (D, TILE_N) f32 — points lane-dense (128-lane axis) for cheap VPU compute.
    # o_ref:   (TILE_N, N_OUT) f32 — the module's row-major output block (no XLA transpose needed).
    # buf_ref: (N_OUT_PAD, CHUNK) f32 VMEM scratch holding one lane-chunk pre-transpose.
    d = N_INPUT_DIMS
    tile_n = x_ref.shape[1]
    chunk = buf_ref.shape[1]
    n_chunks = tile_n // chunk

    comp_base = d if INCLUDE_XYZ else 0
    base_base = comp_base + 2 * d * COMPOSITE_N_FREQS

    # Keep pad rows defined once (they get transposed and then sliced away).
    if N_OUT_PAD > N_OUT:
        buf_ref[N_OUT:, :] = jnp.zeros((N_OUT_PAD - N_OUT, chunk), jnp.float32)

    def process_chunk(ci, carry):
        c0 = pl.multiple_of(ci * chunk, chunk)
        x = x_ref[:, pl.ds(c0, chunk)]                       # (D, CHUNK), lane-dense

        if INCLUDE_XYZ:
            buf_ref[0:d, :] = XYZ_SCALE * x + XYZ_OFFSET

        # Band 0 (freq = 1) directly; bands 2, 4, 8 via the double-angle recurrence on the
        # VPU.  Only the previous band's sin/cos stay live -> no spill at large tiles.
        s = jnp.sin(x)
        c = jnp.cos(x)
        for k in range(MAX_N_FREQS):
            if k > 0:
                s, c = 2.0 * s * c, 1.0 - 2.0 * s * s        # uses previous band's (s, c)
            if k < COMPOSITE_N_FREQS:                        # composite freq encoding slice
                off = comp_base + 2 * d * k
                buf_ref[off:off + d, :] = s
                buf_ref[off + d:off + 2 * d, :] = c
            if k < BASE_N_FREQS:                             # base VanillaFrequency slice
                off = base_base + 2 * d * k
                buf_ref[off:off + d, :] = s
                buf_ref[off + d:off + 2 * d, :] = c

        # Interleave to the module's row-major layout: (N_OUT_PAD, CHUNK) -> (CHUNK, N_OUT_PAD)
        # on the XLU (idle otherwise), then store the valid N_OUT columns.
        t = jnp.transpose(buf_ref[...], (1, 0))
        o_ref[pl.ds(c0, chunk), :] = t[:, :N_OUT]
        return carry

    lax.fori_loop(0, n_chunks, process_chunk, 0)


# ------------------------------- wrapper -----------------------------------
def _round_up(v, m):
    return (v + m - 1) // m * m


@functools.partial(jax.jit, static_argnames=("tile_n",))
def composite_encoding(x, *, tile_n=16384):
    """x: [N, 3] float -> [N, 39] float32, matching CompositeEncoding.forward."""
    n, d = x.shape
    assert d == N_INPUT_DIMS
    assert tile_n % 128 == 0, "tile_n must be a multiple of 128 (lane width)"

    # Don't use a tile (much) larger than the problem; keeps small-N calls cheap.
    tile_n = min(tile_n, _round_up(max(n, 1), 256))
    chunk = 256 if tile_n % 256 == 0 else 128            # inner lane-chunk for the transpose

    # Cheap layout plumbing on the small input only: [N, 3] -> [3, N] so points sit on the
    # 128-lane axis for compute.  The output needs no post-processing at all.
    xt = x.astype(jnp.float32).T

    grid = (pl.cdiv(n, tile_n),)    # ragged last block handled by Pallas (no padding copy)
    return pl.pallas_call(
        composite_encoding_kernel,
        out_shape=jax.ShapeDtypeStruct((n, N_OUT), jnp.float32),
        grid_spec=pltpu.PrefetchScalarGridSpec(
            num_scalar_prefetch=0,
            grid=grid,
            in_specs=[pl.BlockSpec((N_INPUT_DIMS, tile_n), lambda i: (0, i))],
            out_specs=pl.BlockSpec((tile_n, N_OUT), lambda i: (i, 0)),
            scratch_shapes=[pltpu.VMEM((N_OUT_PAD, chunk), jnp.float32)],
        ),
        compiler_params=pltpu.CompilerParams(
            dimension_semantics=("parallel",),
            # lane-padded (TILE_N, 39) output blocks double-buffered: ~16 MiB at 16K points;
            # raise the scoped limit so v5e's 16 MiB default also fits.
            vmem_limit_bytes=32 * 1024 * 1024,
        ),
    )(xt)


# ------------------------------ reference ----------------------------------
def composite_encoding_ref(x):
    x = x.astype(jnp.float32)
    parts = []
    if INCLUDE_XYZ:
        parts.append(XYZ_SCALE * x + XYZ_OFFSET)
    for freq in COMP_FREQ_BANDS:          # composite frequency encoding first
        parts.append(jnp.sin(freq * x))
        parts.append(jnp.cos(freq * x))
    for freq in BASE_FREQ_BANDS:          # then the base VanillaFrequency encoding
        parts.append(jnp.sin(freq * x))
        parts.append(jnp.cos(freq * x))
    return jnp.concatenate(parts, axis=-1)


# --------------------------------- main -------------------------------------
if __name__ == "__main__":
    key = jax.random.PRNGKey(0)
    n_points = 1000  # intentionally not a multiple of any tile (exercises ragged last block)
    x = jax.random.uniform(key, (n_points, N_INPUT_DIMS), dtype=jnp.float32)

    ref = np.asarray(composite_encoding_ref(x))

    # default (large) tile -> single ragged block
    out = jax.block_until_ready(composite_encoding(x))
    assert out.shape == (n_points, N_OUT), (out.shape, N_OUT)
    np.testing.assert_allclose(np.asarray(out), ref, atol=1e-5, rtol=1e-5)

    # small tile -> multi-step grid path (4 steps, last one ragged)
    out2 = jax.block_until_ready(composite_encoding(x, tile_n=256))
    np.testing.assert_allclose(np.asarray(out2), ref, atol=1e-5, rtol=1e-5)

    print("KERNEL_OK")
</pallas_src>

<mosaic_0001>
module attributes {stable_mosaic.version = 11 : i64} {
  func.func @composite_encoding_kernel(%arg0: i32, %arg1: memref<3x1024xf32, #tpu.memory_space<vmem>>, %arg2: memref<1024x39xf32, #tpu.memory_space<vmem>>, %arg3: memref<40x256xf32, #tpu.memory_space<vmem>>) attributes {dimension_semantics = [#tpu.dimension_semantics<parallel>], iteration_bounds = array<i64: 1>, scalar_prefetch = 0 : i64, scratch_operands = 1 : i64, tpu.core_type = #tpu.core_type<tc>, window_params = [{transform_indices = @transform_0, window_bounds = array<i64: 3, 1024>}, {transform_indices = @transform_1, window_bounds = array<i64: 1024, 39>}]} {
    %cst = arith.constant 0.000000e+00 : f32
    %0 = vector.broadcast %cst : f32 to vector<1x256xf32>
    %c39 = arith.constant 39 : index
    %c0 = arith.constant 0 : index
    %1 = vector.load %arg3[%c39, %c0] : memref<40x256xf32, #tpu.memory_space<vmem>>, vector<1x256xf32>
    tpu.vector_store %arg3[%c39, %c0], %0 {strides = array<i32>} : memref<40x256xf32, #tpu.memory_space<vmem>>, vector<1x256xf32>,
    %c0_i32 = arith.constant 0 : i32
    %c4_i32 = arith.constant 4 : i32
    %2 = arith.addi %c0_i32, %c4_i32 : i32
    %c1_i32 = arith.constant 1 : i32
    scf.for %arg4 = %c0_i32 to %2 step %c1_i32  : i32 {
      %c256_i32 = arith.constant 256 : i32
      %3 = arith.muli %arg4, %c256_i32 : i32
      %4 = tpu.assume_multiple %3, 256 : i32
      %c0_1 = arith.constant 0 : index
      %5 = arith.index_cast %4 : i32 to index
      %6 = vector.load %arg1[%c0_1, %5] : memref<3x1024xf32, #tpu.memory_space<vmem>>, vector<3x256xf32>
      %cst_2 = arith.constant 2.000000e+00 : f32
      %7 = vector.broadcast %cst_2 : f32 to vector<3x256xf32>
      %8 = arith.mulf %7, %6 : vector<3x256xf32>
      %cst_3 = arith.constant -1.000000e+00 : f32
      %9 = vector.broadcast %cst_3 : f32 to vector<3x256xf32>
      %10 = arith.addf %8, %9 : vector<3x256xf32>
      %c0_4 = arith.constant 0 : index
      %c0_5 = arith.constant 0 : index
      %11 = vector.load %arg3[%c0_4, %c0_5] : memref<40x256xf32, #tpu.memory_space<vmem>>, vector<3x256xf32>
      tpu.vector_store %arg3[%c0_4, %c0_5], %10 {strides = array<i32>} : memref<40x256xf32, #tpu.memory_space<vmem>>, vector<3x256xf32>,
      %12 = math.sin %6 : vector<3x256xf32>
      %13 = math.cos %6 : vector<3x256xf32>
      %c3 = arith.constant 3 : index
      %c0_6 = arith.constant 0 : index
      %14 = vector.load %arg3[%c3, %c0_6] : memref<40x256xf32, #tpu.memory_space<vmem>>, vector<3x256xf32>
      tpu.vector_store %arg3[%c3, %c0_6], %12 {strides = array<i32>} : memref<40x256xf32, #tpu.memory_space<vmem>>, vector<3x256xf32>,
      %c6 = arith.constant 6 : index
      %c0_7 = arith.constant 0 : index
      %15 = vector.load %arg3[%c6, %c0_7] : memref<40x256xf32, #tpu.memory_space<vmem>>, vector<3x256xf32>
      tpu.vector_store %arg3[%c6, %c0_7], %13 {strides = array<i32>} : memref<40x256xf32, #tpu.memory_space<vmem>>, vector<3x256xf32>,
      %c15 = arith.constant 15 : index
      %c0_8 = arith.constant 0 : index
      %16 = vector.load %arg3[%c15, %c0_8] : memref<40x256xf32, #tpu.memory_space<vmem>>, vector<3x256xf32>
      tpu.vector_store %arg3[%c15, %c0_8], %12 {strides = array<i32>} : memref<40x256xf32, #tpu.memory_space<vmem>>, vector<3x256xf32>,
      %c18 = arith.constant 18 : index
      %c0_9 = arith.constant 0 : index
      %17 = vector.load %arg3[%c18, %c0_9] : memref<40x256xf32, #tpu.memory_space<vmem>>, vector<3x256xf32>
      tpu.vector_store %arg3[%c18, %c0_9], %13 {strides = array<i32>} : memref<40x256xf32, #tpu.memory_space<vmem>>, vector<3x256xf32>,
      %cst_10 = arith.constant 2.000000e+00 : f32
      %18 = vector.broadcast %cst_10 : f32 to vector<3x256xf32>
      %19 = arith.mulf %18, %12 : vector<3x256xf32>
      %20 = arith.mulf %19, %13 : vector<3x256xf32>
      %cst_11 = arith.constant 2.000000e+00 : f32
      %21 = vector.broadcast %cst_11 : f32 to vector<3x256xf32>
      %22 = arith.mulf %21, %12 : vector<3x256xf32>
      %23 = arith.mulf %22, %12 : vector<3x256xf32>
      %cst_12 = arith.constant 1.000000e+00 : f32
      %24 = vector.broadcast %cst_12 : f32 to vector<3x256xf32>
      %25 = arith.subf %24, %23 : vector<3x256xf32>
      %c9 = arith.constant 9 : index
      %c0_13 = arith.constant 0 : index
      %26 = vector.load %arg3[%c9, %c0_13] : memref<40x256xf32, #tpu.memory_space<vmem>>, vector<3x256xf32>
      tpu.vector_store %arg3[%c9, %c0_13], %20 {strides = array<i32>} : memref<40x256xf32, #tpu.memory_space<vmem>>, vector<3x256xf32>,
      %c12 = arith.constant 12 : index
      %c0_14 = arith.constant 0 : index
      %27 = vector.load %arg3[%c12, %c0_14] : memref<40x256xf32, #tpu.memory_space<vmem>>, vector<3x256xf32>
      tpu.vector_store %arg3[%c12, %c0_14], %25 {strides = array<i32>} : memref<40x256xf32, #tpu.memory_space<vmem>>, vector<3x256xf32>,
      %c21 = arith.constant 21 : index
      %c0_15 = arith.constant 0 : index
      %28 = vector.load %arg3[%c21, %c0_15] : memref<40x256xf32, #tpu.memory_space<vmem>>, vector<3x256xf32>
      tpu.vector_store %arg3[%c21, %c0_15], %20 {strides = array<i32>} : memref<40x256xf32, #tpu.memory_space<vmem>>, vector<3x256xf32>,
      %c24 = arith.constant 24 : index
      %c0_16 = arith.constant 0 : index
      %29 = vector.load %arg3[%c24, %c0_16] : memref<40x256xf32, #tpu.memory_space<vmem>>, vector<3x256xf32>
      tpu.vector_store %arg3[%c24, %c0_16], %25 {strides = array<i32>} : memref<40x256xf32, #tpu.memory_space<vmem>>, vector<3x256xf32>,
      %cst_17 = arith.constant 2.000000e+00 : f32
      %30 = vector.broadcast %cst_17 : f32 to vector<3x256xf32>
      %31 = arith.mulf %30, %20 : vector<3x256xf32>
      %32 = arith.mulf %31, %25 : vector<3x256xf32>
      %cst_18 = arith.constant 2.000000e+00 : f32
      %33 = vector.broadcast %cst_18 : f32 to vector<3x256xf32>
      %34 = arith.mulf %33, %20 : vector<3x256xf32>
      %35 = arith.mulf %34, %20 : vector<3x256xf32>
      %cst_19 = arith.constant 1.000000e+00 : f32
      %36 = vector.broadcast %cst_19 : f32 to vector<3x256xf32>
      %37 = arith.subf %36, %35 : vector<3x256xf32>
      %c27 = arith.constant 27 : index
      %c0_20 = arith.constant 0 : index
      %38 = vector.load %arg3[%c27, %c0_20] : memref<40x256xf32, #tpu.memory_space<vmem>>, vector<3x256xf32>
      tpu.vector_store %arg3[%c27, %c0_20], %32 {strides = array<i32>} : memref<40x256xf32, #tpu.memory_space<vmem>>, vector<3x256xf32>,
      %c30 = arith.constant 30 : index
      %c0_21 = arith.constant 0 : index
      %39 = vector.load %arg3[%c30, %c0_21] : memref<40x256xf32, #tpu.memory_space<vmem>>, vector<3x256xf32>
      tpu.vector_store %arg3[%c30, %c0_21], %37 {strides = array<i32>} : memref<40x256xf32, #tpu.memory_space<vmem>>, vector<3x256xf32>,
      %cst_22 = arith.constant 2.000000e+00 : f32
      %40 = vector.broadcast %cst_22 : f32 to vector<3x256xf32>
      %41 = arith.mulf %40, %32 : vector<3x256xf32>
      %42 = arith.mulf %41, %37 : vector<3x256xf32>
      %cst_23 = arith.constant 2.000000e+00 : f32
      %43 = vector.broadcast %cst_23 : f32 to vector<3x256xf32>
      %44 = arith.mulf %43, %32 : vector<3x256xf32>
      %45 = arith.mulf %44, %32 : vector<3x256xf32>
      %cst_24 = arith.constant 1.000000e+00 : f32
      %46 = vector.broadcast %cst_24 : f32 to vector<3x256xf32>
      %47 = arith.subf %46, %45 : vector<3x256xf32>
      %c33 = arith.constant 33 : index
      %c0_25 = arith.constant 0 : index
      %48 = vector.load %arg3[%c33, %c0_25] : memref<40x256xf32, #tpu.memory_space<vmem>>, vector<3x256xf32>
      tpu.vector_store %arg3[%c33, %c0_25], %42 {strides = array<i32>} : memref<40x256xf32, #tpu.memory_space<vmem>>, vector<3x256xf32>,
      %c36 = arith.constant 36 : index
      %c0_26 = arith.constant 0 : index
      %49 = vector.load %arg3[%c36, %c0_26] : memref<40x256xf32, #tpu.memory_space<vmem>>, vector<3x256xf32>
      tpu.vector_store %arg3[%c36, %c0_26], %47 {strides = array<i32>} : memref<40x256xf32, #tpu.memory_space<vmem>>, vector<3x256xf32>,
      %c0_27 = arith.constant 0 : index
      %c0_28 = arith.constant 0 : index
      %50 = vector.load %arg3[%c0_27, %c0_28] : memref<40x256xf32, #tpu.memory_space<vmem>>, vector<40x256xf32>
      %51 = tpu.transpose %50, [1, 0] : vector<40x256xf32> -> vector<256x40xf32>
      %52 = vector.extract_strided_slice %51 {offsets = [0, 0], sizes = [256, 39], strides = [1, 1]} : vector<256x40xf32> to vector<256x39xf32>
      %53 = arith.index_cast %4 : i32 to index
      %c0_29 = arith.constant 0 : index
      %54 = vector.load %arg2[%53, %c0_29] : memref<1024x39xf32, #tpu.memory_space<vmem>>, vector<256x39xf32>
      tpu.vector_store %arg2[%53, %c0_29], %52 {strides = array<i32>} : memref<1024x39xf32, #tpu.memory_space<vmem>>, vector<256x39xf32>,
    }
    %c4_i32_0 = arith.constant 4 : i32
    return
  }
  func.func @transform_0(%arg0: i32) -> (i32, i32) {
    %c0_i32 = arith.constant 0 : i32
    %c0_i32_0 = arith.constant 0 : i32
    return %c0_i32, %arg0 : i32, i32
  }
  func.func @transform_1(%arg0: i32) -> (i32, i32) {
    %c0_i32 = arith.constant 0 : i32
    %c0_i32_0 = arith.constant 0 : i32
    return %arg0, %c0_i32 : i32, i32
  }
}

</mosaic_0001>

<bundles_post_ra>
// kernel: composite_encoding.1
= control target key start
LH: loop header
LB: loop body
LE: loop exit
PB: predicated region body
PF: predicated region fallthrough
CT: control target
= control target key end

     0   :  { %6 = vsyncpa [#allocation4], 0  ;;  %s1072_s6 = smov [#allocation3]   ;;  %s1578_s0 = inlined_call_operand.hbm [shape: f32[3,1000], index: 0, kind: input, shape index: {}]   ;;  %s1579_s1 = inlined_call_operand.vmem [shape: f32[1000,39], index: 1, kind: output, shape index: {}]  }
   0x1   :  { %s13_s7 = sshll.u32 %s1072_s6, 4  ;;  %s1040_s10 = scalar_lea.hbm %s1578_s0, 512  ;;  %s14_s7 = int_to_ptr.vmem [resolvable:$true] %s13_s7 }
   0x2   :  { %p1041_p0 = scmp.ne.s32.totalorder %s1578_s0, %s1040_s10  ;;  %p1044_p1 = scmp.lt.u32.totalorder %s1040_s10, %s1578_s0 }
   0x4   :  { %p1046_p2 = pnand %p1044_p1, %p1041_p0 }
   0x6   :  { %1049 = shalt.err (!%p1046_p2)
}
   0x7   :  { %s1050_s15 = scalar_lea.vmem %s14_s7, 512  ;;  %p1055_p4 = scmp.lt.s32.totalorder %s14_s7, %s14_s7 }
   0x8   :  { %p1051_p3 = scmp.ne.s32.totalorder %s14_s7, %s1050_s15  ;;  %p1056_p5 = scmp.lt.s32.totalorder %s1050_s15, %s1050_s15 }
   0xa   :  { %p1057_p6 = por %p1056_p5, %p1055_p4 }
   0xc   :  { %p1058_p7 = pnand %p1057_p6, %p1051_p3 }
   0xe   :  { %1061 = shalt.err (!%p1058_p7)
}
   0xf   :  { %16 = dma.hbm_to_vmem [thread:$0]  %s1578_s0, 512, %s14_s7, [#allocation4]  }
  0x10   :  { %1066 = dma.done.wait [#allocation4], 512  }
  0x11   :  { %1067 = vsyncadd [#allocation4], 4294966784  ;;  %v20_v0 = vlaneseq  ;;  %v1073_v1 = vmov 0.0   ;;  %s1102_s18 = smov 0  }
  0x13   :  { %vm22_vm0 = vcmp.lt.s32.totalorder %v20_v0, 256 }
  0x14   :  { %25 = vst.msk [vmem:[#allocation2 + $0x47] ss:$8 sm:$0x3] %vm22_vm0, %v1073_v1 }
  0x15 LB: > { %s1005_s19 = sshll.u32 %s1070_s18, 8  ;;  %v1074_v17 = vmov 683565275   ;;  %v1075_v19 = vmov 2475754826   ;;  %s32_s18 = sadd.s32 1, %s1070_s18   ;;  %s1070_s18 = sphi %s1102_s18, %s32_s18  }
  0x16   : > { %s34_s20 = sshra.s32 %s1005_s19, 7  ;;  %v1076_v21 = vmov 2131351028   ;;  %v1077_v23 = vmov 2102212464   ;;  %s1134_s22 = scalar_lea.vmem [#allocation5], %s1005_s19 }
  0x17   : > { %s1006_s21 = sshll.u32 %s34_s20, 2  ;;  %v1078_v25 = vmov 920167782   ;;  %v1079_v32 = vmov 1326507024   ;;  %p29_p8 = scmp.ge.s32.totalorder %s32_s18, 4  }
  0x18   : > { %s37_s0 = scalar_lea.vmem [#allocation3], %s1006_s21 }
  0x19   : > { %v1110_v2 = vld [vmem:[%s37_s0] sm:$0x77] }
  0x1a   : > { %v39_v3 = vmul.f32 2.0, %v1110_v2  ;;  %v49_v4 = vand.u32 2139095040, %v1110_v2  ;;  %v46_v7 = vand.u32 2147483647, %v1110_v2  ;;  %vm48_vm8 = vcmp.lt.s32.totalorder %v1110_v2, 0 }
  0x1b   : > { %vm138_vm0 = vweird.f32 %v1110_v2 }
  0x1c   : > { %v40_v5 = vadd.f32 -1.0, %v39_v3  ;;  %v50_v6 = vshrl.u32 %v49_v4, 23  ;;  %v53_v11 = vand.u32 8388607, %v46_v7  ;;  %vm47_vm9 = vcmp.le.f32.partialorder %v46_v7, 0.7853982 }
  0x1e   : > { %44 = vst [vmem:[#allocation2] sm:$0x7] %v40_v5  ;;  %v1007_v8 = vadd.s32 4294967169, %v50_v6  ;;  %v42_v9 = vcombine.high %v40_v5, %v40_v5  ;;  %v54_v14 = vor.u32 8388608, %v53_v11 }
  0x20   : > { %v56_v10 = vadd.s32 1, %v1007_v8  ;;  %45 = vst [vmem:[#allocation2 + $0x8] sm:$0x7] %v42_v9  ;;  %v94_v34 = vshll.u32 %v54_v14, 8 }
  0x22   : > { %vm57_vm1 = vcmp.gt.s32.totalorder %v56_v10, 0 }
  0x23   : > { %v58_v12 = vsel %vm57_vm1, %v56_v10, 0  ;;  %vm426_vm1 = vcmask 318464  }
  0x24   : > { %v60_v13 = vand.u32 31, %v58_v12  ;;  %v59_v15 = vshrl.u32 %v58_v12, 5 }
  0x26   : > { %v61_v16 = vsub.s32 32, %v60_v13  ;;  %v63_v18 = vshll.u32 %v1074_v17, %v60_v13  ;;  %v66_v20 = vshll.u32 %v1075_v19, %v60_v13  ;;  %v69_v22 = vshll.u32 %v1076_v21, %v60_v13 }
  0x27   : > { %v72_v24 = vshll.u32 %v1077_v23, %v60_v13  ;;  %v75_v26 = vshll.u32 %v1078_v25, %v60_v13  ;;  %vm78_vm2 = vcmp.lt.s32.totalorder %v59_v15, 1  ;;  %vm81_vm3 = vcmp.lt.s32.totalorder %v59_v15, 4 }
  0x28   : > { %v62_v27 = vshrl.u32 %v1074_v17, %v61_v16  ;;  %v64_v28 = vshrl.u32 %v1075_v19, %v61_v16  ;;  %v67_v29 = vshrl.u32 %v1076_v21, %v61_v16  ;;  %v70_v30 = vshrl.u32 %v1077_v23, %v61_v16 }
  0x29   : > { %v73_v31 = vshrl.u32 %v1078_v25, %v61_v16  ;;  %v76_v33 = vshrl.u32 %v1079_v32, %v61_v16  ;;  %vm79_vm4 = vcmp.lt.s32.totalorder %v59_v15, 2  ;;  %vm80_vm5 = vcmp.lt.s32.totalorder %v59_v15, 3 }
  0x2a   : > { %v65_v35 = vor.u32 %v64_v28, %v63_v18  ;;  %v68_v36 = vor.u32 %v67_v29, %v66_v20  ;;  %v71_v37 = vor.u32 %v70_v30, %v69_v22 }
  0x2b   : > { %v74_v38 = vor.u32 %v73_v31, %v72_v24  ;;  %v77_v39 = vor.u32 %v76_v33, %v75_v26 }
  0x2c   : > { %v82_v40 = vsel %vm78_vm2, %v62_v27, %v65_v35  ;;  %v83_v41 = vsel %vm81_vm3, %v71_v37, 2102212464  ;;  %v86_v42 = vsel %vm78_vm2, %v65_v35, %v68_v36  ;;  %v90_v43 = vsel %vm78_vm2, %v68_v36, %v71_v37 }
  0x2d   : > { %v84_v44 = vsel %vm80_vm5, %v68_v36, %v83_v41  ;;  %v87_v45 = vsel %vm81_vm3, %v74_v38, 920167782  ;;  %v91_v46 = vsel %vm81_vm3, %v77_v39, 1326507024 }
  0x2e   : > { %v88_v47 = vsel %vm80_vm5, %v71_v37, %v87_v45  ;;  %v92_v48 = vsel %vm80_vm5, %v74_v38, %v91_v46  ;;  %v85_v49 = vsel %vm79_vm4, %v82_v40, %v84_v44 }
  0x2f   : > { %v89_v50 = vsel %vm79_vm4, %v86_v42, %v88_v47  ;;  %v93_v51 = vsel %vm79_vm4, %v90_v43, %v92_v48  ;;  %v101_v56 = vmul.u32 %v94_v34, %v85_v49 }
  0x30   : > { %v1117_v52 = vmul.u32.u64.low %v94_v34, %v93_v51  ;;  %v1118_v53 = vmul.u32.u64.high %v94_v34, %v93_v51, %v1117_v52  ;;  %v1120_v54 = vmul.u32.u64.low %v94_v34, %v89_v50  ;;  %v1121_v55 = vmul.u32.u64.high %v94_v34, %v89_v50, %v1120_v54 }
  0x32   : > { %vm103_vm6 = vc.u32 %v1118_v53, %v1120_v54  ;;  %v104_v57 = vadd.s32 1, %v1121_v55  ;;  %v102_v5 = vadd.s32 %v1120_v54, %v1118_v53 }
  0x34   : > { %v105_v58 = vsel %vm103_vm6, %v104_v57, %v1121_v55 }
  0x35   : > { %v106_v59 = vadd.s32 %v105_v58, %v101_v56 }
  0x37   : > { %v107_v60 = vadd.s32 536870912, %v106_v59 }
  0x39   : > { %v108_v61 = vshrl.u32 %v107_v60, 30 }
  0x3b   : > { %v109_v62 = vshll.u32 %v108_v61, 30  ;;  %v132_v18 = vsub.s32 4, %v108_v61 }
  0x3d   : > { %v110_v63 = vsub.s32 %v106_v59, %v109_v62  ;;  %v133_v21 = vsel %vm48_vm8, %v132_v18, %v108_v61 }
  0x3e   : > { %v135_v24 = vsel %vm47_vm9, 0, %v133_v21 }
  0x3f   : > { %v112_v0 = vsub.s32 0, %v110_v63  ;;  %v139_v25 = vadd.s32 3, %v135_v24  ;;  %v243_v27 = vand.u32 3, %v135_v24 }
  0x41   : > { %v1008_v1 = vmin.u32 %v112_v0, %v110_v63  ;;  %v140_v26 = vand.u32 3, %v139_v25  ;;  %vm248_vm11 = vcmp.eq.s32.totalorder %v243_v27, 2  ;;  %vm245_vm13 = vcmp.eq.s32.totalorder %v243_v27, 0 }
  0x42   : > { %vm244_vm15 = vcmp.lt.s32.totalorder %v243_v27, 2 }
  0x43   : > { %v114_v3 = vclz %v1008_v1  ;;  %vm145_vm10 = vcmp.eq.s32.totalorder %v140_v26, 2  ;;  %vm142_vm12 = vcmp.eq.s32.totalorder %v140_v26, 0  ;;  %vm141_vm14 = vcmp.lt.s32.totalorder %v140_v26, 2 }
  0x45   : > { %v1009_v4 = vadd.s32 4294967294, %v114_v3 }
  0x47   : > { %vm1010_vm7 = vcmp.lt.s32.totalorder %v1009_v4, 0 }
  0x48   : > { %v117_v6 = vsel %vm1010_vm7, 0, %v1009_v4 }
  0x49   : > { %v118_v8 = vsub.s32 32, %v117_v6  ;;  %v119_v9 = vshll.u32 %v110_v63, %v117_v6  ;;  %v122_v10 = vsub.s32 4294967266, %v117_v6 }
  0x4b   : > { %v120_v11 = vshrl.u32 %v102_v5, %v118_v8  ;;  %v123_v12 = vadd.s32 127, %v122_v10 }
  0x4d   : > { %v121_v13 = vor.u32 %v120_v11, %v119_v9  ;;  %v124_v14 = vshll.u32 %v123_v12, 23 }
  0x4f   : > { %v125_v15 = vor.u32 4788187, %v124_v14  ;;  %v128_v16 = vcvt.s32.f32 %v121_v13 }
  0x51   : > { %v126_v17 = vand.u32 2147483647, %v125_v15 }
  0x53   : > { %v129_v19 = vmul.f32 %v128_v16, %v126_v17 }
  0x55   : > { %v130_v20 = vxor.u32 2147483648, %v129_v19 }
  0x57   : > { %v131_v22 = vsel %vm48_vm8, %v130_v20, %v129_v19 }
  0x58   : > { %v134_v23 = vsel %vm47_vm9, %v1110_v2, %v131_v22 }
  0x59   : > { %1036 = vcosq.f32 %v134_v23 }
  0x5a   : > { %1038 = vsinq.f32 %v134_v23 }
  0x63   : > { %v1037_v28 = vpop.eup %1036 }
  0x64   : > { %v1039_v29 = vpop.eup %1038  ;;  %v146_v30 = vxor.u32 2147483648, %v1037_v28 }
  0x65   : > { %v143_v7 = vxor.u32 2147483648, %v1039_v29 }
  0x66   : > { %v147_v31 = vsel %vm145_vm10, %v146_v30, %v1039_v29  ;;  %v250_v32 = vsel %vm248_vm11, %v146_v30, %v1039_v29 }
  0x67   : > { %v144_v33 = vsel %vm142_vm12, %v1037_v28, %v143_v7  ;;  %v247_v34 = vsel %vm245_vm13, %v1037_v28, %v143_v7 }
  0x68   : > { %v148_v35 = vsel %vm141_vm14, %v144_v33, %v147_v31  ;;  %v251_v36 = vsel %vm244_vm15, %v247_v34, %v250_v32 }
  0x69   : > { %v149_v37 = vsel %vm138_vm0, nan, %v148_v35  ;;  %v252_v38 = vsel %vm138_vm0, nan, %v251_v36 }
  0x6a   : > { %v255_v39 = vrot.slane %v149_v37, 5  ;;  %v263_v40 = vrot.slane %v252_v38, 2  ;;  %v285_v41 = vmul.f32 2.0, %v149_v37  ;;  %v254_v42 = vcombine.high %v149_v37, %v149_v37 }
  0x6b   : > { %v262_v43 = vcombine.high %v252_v38, %v252_v38  ;;  %v271_v44 = vrot.slane %v149_v37, 1  ;;  %v279_v45 = vrot.slane %v252_v38, 6 }
  0x6c   : > { %259 = vst [vmem:[#allocation2] sm:$0x38] %v255_v39  ;;  %267 = vst [vmem:[#allocation2 + $0x10] ss:$-12 sps:$4 sm:$0xc1] %v263_v40   ;;  %v286_v46 = vmul.f32 %v285_v41, %v252_v38  ;;  %v287_v47 = vmul.f32 %v285_v41, %v149_v37  ;;  %v256_v2 = vrot.slane %v254_v42, 5 }
  0x6d   : > { %v272_v48 = vrot.slane %v254_v42, 1  ;;  %v264_v49 = vrot.slane %v262_v43, 2  ;;  %275 = vst [vmem:[#allocation2 + $0x20] ss:$-12 sps:$4 sm:$0x83] %v271_v44   ;;  %v280_v50 = vrot.slane %v262_v43, 6 }
  0x6e   : > { %283 = vst [vmem:[#allocation2 + $0x20] sm:$0x1c] %v279_v45  ;;  %v288_v51 = vsub.f32 1.0, %v287_v47  ;;  %260 = vst [vmem:[#allocation2 + $0x8] sm:$0x38] %v256_v2  ;;  %v291_v52 = vrot.slane %v286_v46, 7  ;;  %v290_v53 = vcombine.high %v286_v46, %v286_v46 }
  0x6f   : > { %276 = vst [vmem:[#allocation2 + $0x28] ss:$-12 sps:$4 sm:$0x83] %v272_v48   ;;  %v302_v54 = vrot.slane %v286_v46, 3  ;;  %284 = vst [vmem:[#allocation2 + $0x28] sm:$0x1c] %v280_v50 }
  0x70   : > { %268 = vst [vmem:[#allocation2 + $0x18] ss:$-12 sps:$4 sm:$0xc1] %v264_v49   ;;  %v312_v55 = vmul.f32 2.0, %v286_v46  ;;  %295 = vst [vmem:[#allocation2 + $0x10] sm:$0xe] %v291_v52  ;;  %v298_v56 = vcombine.low %v288_v51, %v288_v51  ;;  %v308_v59 = vcombine.high %v288_v51, %v288_v51 }
  0x71   : > { %301 = vst [vmem:[#allocation2 + $0x30] ss:$-20 sps:$4 sm:$0x77] %v288_v51   ;;  %v292_v57 = vrot.slane %v290_v53, 7  ;;  %306 = vst [vmem:[#allocation2 + $0x20] sm:$0xe0] %v302_v54 }
  0x72   : > { %v303_v58 = vrot.slane %v290_v53, 3  ;;  %v313_v60 = vmul.f32 %v312_v55, %v288_v51  ;;  %v314_v61 = vmul.f32 %v312_v55, %v286_v46  ;;  %300 = vst [vmem:[#allocation2 + $0x10] sm:$0x70] %v298_v56  ;;  %311 = vst [vmem:[#allocation2 + $0x38] sm:$0x7] %v308_v59 }
  0x73   : > { %296 = vst [vmem:[#allocation2 + $0x18] sm:$0xe] %v292_v57  ;;  %v351_v62 = vld [vmem:[#allocation2] sm:$0xff] }
  0x74   : > { %307 = vst [vmem:[#allocation2 + $0x28] sm:$0xe0] %v303_v58  ;;  %v315_v63 = vsub.f32 1.0, %v314_v61  ;;  %v318_v0 = vrot.slane %v313_v60, 5  ;;  %v317_v1 = vcombine.high %v313_v60, %v313_v60  ;;  %v334_v3 = vmul.f32 2.0, %v313_v60  ;;  %361 = vxpose.xlu0.b32.start [1/5] (short) %v351_v62, 128 }
  0x76   : > { %322 = vst [vmem:[#allocation2 + $0x30] sm:$0x38] %v318_v0  ;;  %v326_v4 = vrot.slane %v315_v63, 2  ;;  %v319_v5 = vrot.slane %v317_v1, 5  ;;  %v325_v6 = vcombine.high %v315_v63, %v315_v63  ;;  %v335_v8 = vmul.f32 %v334_v3, %v315_v63 }
  0x77   : > { %v352_v9 = vld [vmem:[#allocation2 + $0x8] sm:$0xff]  ;;  %v336_v10 = vmul.f32 %v334_v3, %v313_v60 }
  0x78   : > { %393 = vxpose.xlu1.b32.start [1/5] (short) %v352_v9, 128  ;;  %330 = vst [vmem:[#allocation2 + $0x40] ss:$-12 sps:$4 sm:$0xc1] %v326_v4   ;;  %323 = vst [vmem:[#allocation2 + $0x38] sm:$0x38] %v319_v5  ;;  %v327_v11 = vrot.slane %v325_v6, 2  ;;  %v339_v13 = vcombine.high %v335_v8, %v335_v8 }
  0x79   : > { %v340_v12 = vrot.slane %v335_v8, 7  ;;  %v337_v14 = vsub.f32 1.0, %v336_v10  ;;  %v353_v15 = vld [vmem:[#allocation2 + $0x10] sm:$0xff]  ;;  %v355_v19 = vld [vmem:[#allocation2 + $0x20] sm:$0xff] }
  0x7a   : > { %v354_v16 = vld [vmem:[#allocation2 + $0x18] sm:$0xff]  ;;  %331 = vst [vmem:[#allocation2 + $0x48] ss:$-12 sps:$4 sm:$0xc1] %v327_v11   ;;  %v341_v17 = vrot.slane %v339_v13, 7  ;;  %362 = vxpose.xlu0.b32.cont [2/5] (short) %v353_v15, 128 }
  0x7b   : > { %344 = vst [vmem:[#allocation2 + $0x40] sm:$0xe] %v340_v12  ;;  %v347_v18 = vcombine.low %v337_v14, %v337_v14  ;;  %350 = vst [vmem:[#allocation2 + $0x48] sm:$0x70] %v337_v14  ;;  %v356_v20 = vld [vmem:[#allocation2 + $0x28] sm:$0xff] }
  0x7c   : > { %394 = vxpose.xlu1.b32.cont [2/5] (short) %v354_v16, 128  ;;  %345 = vst [vmem:[#allocation2 + $0x48] sm:$0xe] %v341_v17 }
  0x7d   : > { %349 = vst [vmem:[#allocation2 + $0x40] sm:$0x70] %v347_v18 }
  0x7e   : > { %363 = vxpose.xlu0.b32.cont [3/5] (short) %v355_v19, 128 }
  0x7f   : > { %v357_v21 = vld [vmem:[#allocation2 + $0x30] sm:$0xff] }
  0x80   : > { %395 = vxpose.xlu1.b32.cont [3/5] (short) %v356_v20, 128 }
  0x81   : > { %v358_v22 = vld [vmem:[#allocation2 + $0x38] sm:$0xff] }
  0x82   : > { %364 = vxpose.xlu0.b32.cont [4/5] (short) %v357_v21, 128 }
  0x83   : > { %v360_v24 = vld [vmem:[#allocation2 + $0x48] sm:$0xff] }
  0x84   : > { %396 = vxpose.xlu1.b32.cont [4/5] (short) %v358_v22, 128  ;;  %v359_v23 = vld [vmem:[#allocation2 + $0x40] sm:$0xff] }
  0x86   : > { %365 = vxpose.xlu0.b32.end [5/5] (short) %v359_v23, 128 }
  0x88   : > { %397 = vxpose.xlu1.b32.end [5/5] (short) %v360_v24, 128 }
  0xf6   : > { %v377_v25 = vpop.trf.xlu0 }
  0xf7   : > { %427 = vst.msk [vmem:[%s1134_s22] sm:$0xff] %vm426_vm1, %v377_v25 }
  0xf8   : > { %v409_v26 = vpop.trf.xlu1 }
  0xf9   : > { %443 = vst.msk [vmem:[%s1134_s22 + $0x80] sm:$0xff] %vm426_vm1, %v409_v26 }
  0xfa   : > { %v378_v27 = vpop.trf.xlu0 }
  0xfb   : > { %428 = vst.msk [vmem:[%s1134_s22 + $0x8] sm:$0xff] %vm426_vm1, %v378_v27 }
  0xfc   : > { %v410_v28 = vpop.trf.xlu1 }
  0xfd   : > { %444 = vst.msk [vmem:[%s1134_s22 + $0x88] sm:$0xff] %vm426_vm1, %v410_v28 }
  0xfe   : > { %v379_v29 = vpop.trf.xlu0 }
  0xff   : > { %429 = vst.msk [vmem:[%s1134_s22 + $0x10] sm:$0xff] %vm426_vm1, %v379_v29 }
 0x100   : > { %v411_v30 = vpop.trf.xlu1 }
 0x101   : > { %445 = vst.msk [vmem:[%s1134_s22 + $0x90] sm:$0xff] %vm426_vm1, %v411_v30 }
 0x102   : > { %v380_v7 = vpop.trf.xlu0 }
 0x103   : > { %430 = vst.msk [vmem:[%s1134_s22 + $0x18] sm:$0xff] %vm426_vm1, %v380_v7 }
 0x104   : > { %v412_v31 = vpop.trf.xlu1 }
 0x105   : > { %446 = vst.msk [vmem:[%s1134_s22 + $0x98] sm:$0xff] %vm426_vm1, %v412_v31 }
 0x106   : > { %v381_v32 = vpop.trf.xlu0 }
 0x107   : > { %431 = vst.msk [vmem:[%s1134_s22 + $0x20] sm:$0xff] %vm426_vm1, %v381_v32 }
 0x108   : > { %v413_v33 = vpop.trf.xlu1 }
 0x109   : > { %447 = vst.msk [vmem:[%s1134_s22 + $0xa0] sm:$0xff] %vm426_vm1, %v413_v33 }
 0x10a   : > { %v382_v34 = vpop.trf.xlu0 }
 0x10b   : > { %432 = vst.msk [vmem:[%s1134_s22 + $0x28] sm:$0xff] %vm426_vm1, %v382_v34 }
 0x10c   : > { %v414_v35 = vpop.trf.xlu1 }
 0x10d   : > { %448 = vst.msk [vmem:[%s1134_s22 + $0xa8] sm:$0xff] %vm426_vm1, %v414_v35 }
 0x10e   : > { %v383_v36 = vpop.trf.xlu0 }
 0x10f   : > { %433 = vst.msk [vmem:[%s1134_s22 + $0x30] sm:$0xff] %vm426_vm1, %v383_v36 }
 0x110   : > { %v415_v37 = vpop.trf.xlu1 }
 0x111   : > { %449 = vst.msk [vmem:[%s1134_s22 + $0xb0] sm:$0xff] %vm426_vm1, %v415_v37 }
 0x112   : > { %v384_v38 = vpop.trf.xlu0 }
 0x113   : > { %434 = vst.msk [vmem:[%s1134_s22 + $0x38] sm:$0xff] %vm426_vm1, %v384_v38 }
 0x114   : > { %v416_v39 = vpop.trf.xlu1 }
 0x115   : > { %450 = vst.msk [vmem:[%s1134_s22 + $0xb8] sm:$0xff] %vm426_vm1, %v416_v39 }
 0x116   : > { %v385_v40 = vpop.trf.xlu0 }
 0x117   : > { %435 = vst.msk [vmem:[%s1134_s22 + $0x40] sm:$0xff] %vm426_vm1, %v385_v40 }
 0x118   : > { %v417_v41 = vpop.trf.xlu1 }
 0x119   : > { %451 = vst.msk [vmem:[%s1134_s22 + $0xc0] sm:$0xff] %vm426_vm1, %v417_v41 }
 0x11a   : > { %v386_v42 = vpop.trf.xlu0 }
 0x11b   : > { %436 = vst.msk [vmem:[%s1134_s22 + $0x48] sm:$0xff] %vm426_vm1, %v386_v42 }
 0x11c   : > { %v418_v43 = vpop.trf.xlu1 }
 0x11d   : > { %452 = vst.msk [vmem:[%s1134_s22 + $0xc8] sm:$0xff] %vm426_vm1, %v418_v43 }
 0x11e   : > { %v387_v44 = vpop.trf.xlu0 }
 0x11f   : > { %437 = vst.msk [vmem:[%s1134_s22 + $0x50] sm:$0xff] %vm426_vm1, %v387_v44 }
 0x120   : > { %v419_v45 = vpop.trf.xlu1 }
 0x121   : > { %453 = vst.msk [vmem:[%s1134_s22 + $0xd0] sm:$0xff] %vm426_vm1, %v419_v45 }
 0x122   : > { %v388_v46 = vpop.trf.xlu0 }
 0x123   : > { %438 = vst.msk [vmem:[%s1134_s22 + $0x58] sm:$0xff] %vm426_vm1, %v388_v46 }
 0x124   : > { %v420_v47 = vpop.trf.xlu1 }
 0x125   : > { %454 = vst.msk [vmem:[%s1134_s22 + $0xd8] sm:$0xff] %vm426_vm1, %v420_v47 }
 0x126   : > { %v389_v2 = vpop.trf.xlu0 }
 0x127   : > { %439 = vst.msk [vmem:[%s1134_s22 + $0x60] sm:$0xff] %vm426_vm1, %v389_v2 }
 0x128   : > { %v421_v48 = vpop.trf.xlu1 }
 0x129   : > { %455 = vst.msk [vmem:[%s1134_s22 + $0xe0] sm:$0xff] %vm426_vm1, %v421_v48 }
 0x12a   : > { %v390_v49 = vpop.trf.xlu0 }
 0x12b   : > { %440 = vst.msk [vmem:[%s1134_s22 + $0x68] sm:$0xff] %vm426_vm1, %v390_v49 }
 0x12c   : > { %v422_v50 = vpop.trf.xlu1 }
 0x12d   : > { %456 = vst.msk [vmem:[%s1134_s22 + $0xe8] sm:$0xff] %vm426_vm1, %v422_v50 }
 0x12e   : > { %v391_v51 = vpop.trf.xlu0 }
 0x12f   : > { %441 = vst.msk [vmem:[%s1134_s22 + $0x70] sm:$0xff] %vm426_vm1, %v391_v51  ;;  %31 = sbr.rel (!%p29_p8) target bundleno = 21 (0x15), region = 76 }
 0x130   : > { %v423_v52 = vpop.trf.xlu1 }
 0x131   : > { %457 = vst.msk [vmem:[%s1134_s22 + $0xf0] sm:$0xff] %vm426_vm1, %v423_v52 }
 0x132   : > { %v392_v53 = vpop.trf.xlu0 }
 0x133   : > { %442 = vst.msk [vmem:[%s1134_s22 + $0x78] sm:$0xff] %vm426_vm1, %v392_v53 }
 0x134   : > { %v424_v54 = vpop.trf.xlu1 }
 0x135   : > { %458 = vst.msk [vmem:[%s1134_s22 + $0xf8] sm:$0xff] %vm426_vm1, %v424_v54 }
 0x13c   :  { %v736_v55 = vld [vmem:[#allocation5] sm:$0xff]  ;;  %v738_v56 = vld [vmem:[#allocation5 + $0x8] sm:$0xff]  ;;  %v740_v57 = vld [vmem:[#allocation5 + $0x10] sm:$0xff] }
 0x13d   :  { %737 = vst [vmem:[%s1579_s1] sm:$0xff] %v736_v55  ;;  %739 = vst [vmem:[%s1579_s1 + $0x8] sm:$0xff] %v738_v56  ;;  %v742_v58 = vld [vmem:[#allocation5 + $0x18] sm:$0xff]  ;;  %v744_v59 = vld [vmem:[#allocation5 + $0x20] sm:$0xff] }
 0x13e   :  { %741 = vst [vmem:[%s1579_s1 + $0x10] sm:$0xff] %v740_v57  ;;  %v746_v60 = vld [vmem:[#allocation5 + $0x28] sm:$0xff]  ;;  %743 = vst [vmem:[%s1579_s1 + $0x18] sm:$0xff] %v742_v58  ;;  %v748_v61 = vld [vmem:[#allocation5 + $0x30] sm:$0xff] }
 0x13f   :  { %745 = vst [vmem:[%s1579_s1 + $0x20] sm:$0xff] %v744_v59  ;;  %747 = vst [vmem:[%s1579_s1 + $0x28] sm:$0xff] %v746_v60  ;;  %v750_v62 = vld [vmem:[#allocation5 + $0x38] sm:$0xff]  ;;  %v752_v63 = vld [vmem:[#allocation5 + $0x40] sm:$0xff] }
 0x140   :  { %749 = vst [vmem:[%s1579_s1 + $0x30] sm:$0xff] %v748_v61  ;;  %751 = vst [vmem:[%s1579_s1 + $0x38] sm:$0xff] %v750_v62  ;;  %v754_v0 = vld [vmem:[#allocation5 + $0x48] sm:$0xff]  ;;  %v756_v1 = vld [vmem:[#allocation5 + $0x50] sm:$0xff] }
 0x141   :  { %753 = vst [vmem:[%s1579_s1 + $0x40] sm:$0xff] %v752_v63  ;;  %v758_v3 = vld [vmem:[#allocation5 + $0x58] sm:$0xff]  ;;  %755 = vst [vmem:[%s1579_s1 + $0x48] sm:$0xff] %v754_v0  ;;  %v760_v4 = vld [vmem:[#allocation5 + $0x60] sm:$0xff] }
 0x142   :  { %757 = vst [vmem:[%s1579_s1 + $0x50] sm:$0xff] %v756_v1  ;;  %759 = vst [vmem:[%s1579_s1 + $0x58] sm:$0xff] %v758_v3  ;;  %v762_v5 = vld [vmem:[#allocation5 + $0x68] sm:$0xff]  ;;  %v764_v6 = vld [vmem:[#allocation5 + $0x70] sm:$0xff] }
 0x143   :  { %761 = vst [vmem:[%s1579_s1 + $0x60] sm:$0xff] %v760_v4  ;;  %763 = vst [vmem:[%s1579_s1 + $0x68] sm:$0xff] %v762_v5  ;;  %v766_v8 = vld [vmem:[#allocation5 + $0x78] sm:$0xff]  ;;  %v768_v9 = vld [vmem:[#allocation5 + $0x80] sm:$0xff] }
 0x144   :  { %765 = vst [vmem:[%s1579_s1 + $0x70] sm:$0xff] %v764_v6  ;;  %v770_v10 = vld [vmem:[#allocation5 + $0x88] sm:$0xff]  ;;  %767 = vst [vmem:[%s1579_s1 + $0x78] sm:$0xff] %v766_v8  ;;  %v772_v11 = vld [vmem:[#allocation5 + $0x90] sm:$0xff] }
 0x145   :  { %769 = vst [vmem:[%s1579_s1 + $0x80] sm:$0xff] %v768_v9  ;;  %771 = vst [vmem:[%s1579_s1 + $0x88] sm:$0xff] %v770_v10  ;;  %v774_v12 = vld [vmem:[#allocation5 + $0x98] sm:$0xff]  ;;  %v776_v13 = vld [vmem:[#allocation5 + $0xa0] sm:$0xff] }
 0x146   :  { %773 = vst [vmem:[%s1579_s1 + $0x90] sm:$0xff] %v772_v11  ;;  %775 = vst [vmem:[%s1579_s1 + $0x98] sm:$0xff] %v774_v12  ;;  %v778_v14 = vld [vmem:[#allocation5 + $0xa8] sm:$0xff]  ;;  %v780_v15 = vld [vmem:[#allocation5 + $0xb0] sm:$0xff] }
 0x147   :  { %777 = vst [vmem:[%s1579_s1 + $0xa0] sm:$0xff] %v776_v13  ;;  %v782_v16 = vld [vmem:[#allocation5 + $0xb8] sm:$0xff]  ;;  %779 = vst [vmem:[%s1579_s1 + $0xa8] sm:$0xff] %v778_v14  ;;  %v784_v17 = vld [vmem:[#allocation5 + $0xc0] sm:$0xff] }
 0x148   :  { %781 = vst [vmem:[%s1579_s1 + $0xb0] sm:$0xff] %v780_v15  ;;  %783 = vst [vmem:[%s1579_s1 + $0xb8] sm:$0xff] %v782_v16  ;;  %v786_v18 = vld [vmem:[#allocation5 + $0xc8] sm:$0xff]  ;;  %v788_v19 = vld [vmem:[#allocation5 + $0xd0] sm:$0xff] }
 0x149   :  { %785 = vst [vmem:[%s1579_s1 + $0xc0] sm:$0xff] %v784_v17  ;;  %787 = vst [vmem:[%s1579_s1 + $0xc8] sm:$0xff] %v786_v18  ;;  %v790_v20 = vld [vmem:[#allocation5 + $0xd8] sm:$0xff]  ;;  %v792_v21 = vld [vmem:[#allocation5 + $0xe0] sm:$0xff] }
 0x14a   :  { %789 = vst [vmem:[%s1579_s1 + $0xd0] sm:$0xff] %v788_v19  ;;  %v794_v22 = vld [vmem:[#allocation5 + $0xe8] sm:$0xff]  ;;  %791 = vst [vmem:[%s1579_s1 + $0xd8] sm:$0xff] %v790_v20  ;;  %v796_v23 = vld [vmem:[#allocation5 + $0xf0] sm:$0xff] }
 0x14b   :  { %793 = vst [vmem:[%s1579_s1 + $0xe0] sm:$0xff] %v792_v21  ;;  %795 = vst [vmem:[%s1579_s1 + $0xe8] sm:$0xff] %v794_v22  ;;  %v798_v24 = vld [vmem:[#allocation5 + $0xf8] sm:$0xff]  ;;  %v800_v25 = vld [vmem:[#allocation5 + $0x100] sm:$0xff] }
 0x14c   :  { %797 = vst [vmem:[%s1579_s1 + $0xf0] sm:$0xff] %v796_v23  ;;  %799 = vst [vmem:[%s1579_s1 + $0xf8] sm:$0xff] %v798_v24  ;;  %v802_v26 = vld [vmem:[#allocation5 + $0x108] sm:$0xff]  ;;  %v804_v27 = vld [vmem:[#allocation5 + $0x110] sm:$0xff] }
 0x14d   :  { %801 = vst [vmem:[%s1579_s1 + $0x100] sm:$0xff] %v800_v25  ;;  %v806_v28 = vld [vmem:[#allocation5 + $0x118] sm:$0xff]  ;;  %803 = vst [vmem:[%s1579_s1 + $0x108] sm:$0xff] %v802_v26  ;;  %v808_v29 = vld [vmem:[#allocation5 + $0x120] sm:$0xff] }
 0x14e   :  { %805 = vst [vmem:[%s1579_s1 + $0x110] sm:$0xff] %v804_v27  ;;  %807 = vst [vmem:[%s1579_s1 + $0x118] sm:$0xff] %v806_v28  ;;  %v810_v30 = vld [vmem:[#allocation5 + $0x128] sm:$0xff]  ;;  %v812_v7 = vld [vmem:[#allocation5 + $0x130] sm:$0xff] }
 0x14f   :  { %809 = vst [vmem:[%s1579_s1 + $0x120] sm:$0xff] %v808_v29  ;;  %811 = vst [vmem:[%s1579_s1 + $0x128] sm:$0xff] %v810_v30  ;;  %v814_v31 = vld [vmem:[#allocation5 + $0x138] sm:$0xff]  ;;  %v816_v32 = vld [vmem:[#allocation5 + $0x140] sm:$0xff] }
 0x150   :  { %813 = vst [vmem:[%s1579_s1 + $0x130] sm:$0xff] %v812_v7  ;;  %v818_v33 = vld [vmem:[#allocation5 + $0x148] sm:$0xff]  ;;  %815 = vst [vmem:[%s1579_s1 + $0x138] sm:$0xff] %v814_v31  ;;  %v820_v34 = vld [vmem:[#allocation5 + $0x150] sm:$0xff] }
 0x151   :  { %817 = vst [vmem:[%s1579_s1 + $0x140] sm:$0xff] %v816_v32  ;;  %819 = vst [vmem:[%s1579_s1 + $0x148] sm:$0xff] %v818_v33  ;;  %v822_v35 = vld [vmem:[#allocation5 + $0x158] sm:$0xff]  ;;  %v824_v36 = vld [vmem:[#allocation5 + $0x160] sm:$0xff] }
 0x152   :  { %821 = vst [vmem:[%s1579_s1 + $0x150] sm:$0xff] %v820_v34  ;;  %823 = vst [vmem:[%s1579_s1 + $0x158] sm:$0xff] %v822_v35  ;;  %v826_v37 = vld [vmem:[#allocation5 + $0x168] sm:$0xff]  ;;  %v828_v38 = vld [vmem:[#allocation5 + $0x170] sm:$0xff] }
 0x153   :  { %825 = vst [vmem:[%s1579_s1 + $0x160] sm:$0xff] %v824_v36  ;;  %v830_v39 = vld [vmem:[#allocation5 + $0x178] sm:$0xff]  ;;  %827 = vst [vmem:[%s1579_s1 + $0x168] sm:$0xff] %v826_v37  ;;  %v832_v40 = vld [vmem:[#allocation5 + $0x180] sm:$0xff] }
 0x154   :  { %829 = vst [vmem:[%s1579_s1 + $0x170] sm:$0xff] %v828_v38  ;;  %831 = vst [vmem:[%s1579_s1 + $0x178] sm:$0xff] %v830_v39  ;;  %v834_v41 = vld [vmem:[#allocation5 + $0x188] sm:$0xff]  ;;  %v836_v42 = vld [vmem:[#allocation5 + $0x190] sm:$0xff] }
 0x155   :  { %833 = vst [vmem:[%s1579_s1 + $0x180] sm:$0xff] %v832_v40  ;;  %835 = vst [vmem:[%s1579_s1 + $0x188] sm:$0xff] %v834_v41  ;;  %v838_v43 = vld [vmem:[#allocation5 + $0x198] sm:$0xff]  ;;  %v840_v44 = vld [vmem:[#allocation5 + $0x1a0] sm:$0xff] }
 0x156   :  { %837 = vst [vmem:[%s1579_s1 + $0x190] sm:$0xff] %v836_v42  ;;  %v842_v45 = vld [vmem:[#allocation5 + $0x1a8] sm:$0xff]  ;;  %839 = vst [vmem:[%s1579_s1 + $0x198] sm:$0xff] %v838_v43  ;;  %v844_v46 = vld [vmem:[#allocation5 + $0x1b0] sm:$0xff] }
 0x157   :  { %841 = vst [vmem:[%s1579_s1 + $0x1a0] sm:$0xff] %v840_v44  ;;  %843 = vst [vmem:[%s1579_s1 + $0x1a8] sm:$0xff] %v842_v45  ;;  %v846_v47 = vld [vmem:[#allocation5 + $0x1b8] sm:$0xff]  ;;  %v848_v2 = vld [vmem:[#allocation5 + $0x1c0] sm:$0xff] }
 0x158   :  { %845 = vst [vmem:[%s1579_s1 + $0x1b0] sm:$0xff] %v844_v46  ;;  %847 = vst [vmem:[%s1579_s1 + $0x1b8] sm:$0xff] %v846_v47  ;;  %v850_v48 = vld [vmem:[#allocation5 + $0x1c8] sm:$0xff]  ;;  %v852_v49 = vld [vmem:[#allocation5 + $0x1d0] sm:$0xff] }
 0x159   :  { %849 = vst [vmem:[%s1579_s1 + $0x1c0] sm:$0xff] %v848_v2  ;;  %v854_v50 = vld [vmem:[#allocation5 + $0x1d8] sm:$0xff]  ;;  %851 = vst [vmem:[%s1579_s1 + $0x1c8] sm:$0xff] %v850_v48  ;;  %v856_v51 = vld [vmem:[#allocation5 + $0x1e0] sm:$0xff] }
 0x15a   :  { %853 = vst [vmem:[%s1579_s1 + $0x1d0] sm:$0xff] %v852_v49  ;;  %855 = vst [vmem:[%s1579_s1 + $0x1d8] sm:$0xff] %v854_v50  ;;  %v858_v52 = vld [vmem:[#allocation5 + $0x1e8] sm:$0xff]  ;;  %v860_v53 = vld [vmem:[#allocation5 + $0x1f0] sm:$0xff] }
 0x15b   :  { %857 = vst [vmem:[%s1579_s1 + $0x1e0] sm:$0xff] %v856_v51  ;;  %859 = vst [vmem:[%s1579_s1 + $0x1e8] sm:$0xff] %v858_v52  ;;  %v862_v54 = vld [vmem:[#allocation5 + $0x1f8] sm:$0xff]  ;;  %v864_v55 = vld [vmem:[#allocation5 + $0x200] sm:$0xff] }
 0x15c   :  { %861 = vst [vmem:[%s1579_s1 + $0x1f0] sm:$0xff] %v860_v53  ;;  %v866_v56 = vld [vmem:[#allocation5 + $0x208] sm:$0xff]  ;;  %863 = vst [vmem:[%s1579_s1 + $0x1f8] sm:$0xff] %v862_v54  ;;  %v868_v57 = vld [vmem:[#allocation5 + $0x210] sm:$0xff] }
 0x15d   :  { %865 = vst [vmem:[%s1579_s1 + $0x200] sm:$0xff] %v864_v55  ;;  %867 = vst [vmem:[%s1579_s1 + $0x208] sm:$0xff] %v866_v56  ;;  %v870_v58 = vld [vmem:[#allocation5 + $0x218] sm:$0xff]  ;;  %v872_v59 = vld [vmem:[#allocation5 + $0x220] sm:$0xff] }
 0x15e   :  { %869 = vst [vmem:[%s1579_s1 + $0x210] sm:$0xff] %v868_v57  ;;  %871 = vst [vmem:[%s1579_s1 + $0x218] sm:$0xff] %v870_v58  ;;  %v874_v60 = vld [vmem:[#allocation5 + $0x228] sm:$0xff]  ;;  %v876_v61 = vld [vmem:[#allocation5 + $0x230] sm:$0xff] }
 0x15f   :  { %873 = vst [vmem:[%s1579_s1 + $0x220] sm:$0xff] %v872_v59  ;;  %v878_v62 = vld [vmem:[#allocation5 + $0x238] sm:$0xff]  ;;  %875 = vst [vmem:[%s1579_s1 + $0x228] sm:$0xff] %v874_v60  ;;  %v880_v63 = vld [vmem:[#allocation5 + $0x240] sm:$0xff] }
 0x160   :  { %877 = vst [vmem:[%s1579_s1 + $0x230] sm:$0xff] %v876_v61  ;;  %879 = vst [vmem:[%s1579_s1 + $0x238] sm:$0xff] %v878_v62  ;;  %v882_v0 = vld [vmem:[#allocation5 + $0x248] sm:$0xff]  ;;  %v884_v1 = vld [vmem:[#allocation5 + $0x250] sm:$0xff] }
 0x161   :  { %881 = vst [vmem:[%s1579_s1 + $0x240] sm:$0xff] %v880_v63  ;;  %883 = vst [vmem:[%s1579_s1 + $0x248] sm:$0xff] %v882_v0  ;;  %v886_v3 = vld [vmem:[#allocation5 + $0x258] sm:$0xff]  ;;  %v888_v4 = vld [vmem:[#allocation5 + $0x260] sm:$0xff] }
 0x162   :  { %885 = vst [vmem:[%s1579_s1 + $0x250] sm:$0xff] %v884_v1  ;;  %v890_v5 = vld [vmem:[#allocation5 + $0x268] sm:$0xff]  ;;  %887 = vst [vmem:[%s1579_s1 + $0x258] sm:$0xff] %v886_v3  ;;  %v892_v6 = vld [vmem:[#allocation5 + $0x270] sm:$0xff] }
 0x163   :  { %889 = vst [vmem:[%s1579_s1 + $0x260] sm:$0xff] %v888_v4  ;;  %891 = vst [vmem:[%s1579_s1 + $0x268] sm:$0xff] %v890_v5  ;;  %v894_v8 = vld [vmem:[#allocation5 + $0x278] sm:$0xff]  ;;  %v896_v9 = vld [vmem:[#allocation5 + $0x280] sm:$0xff] }
 0x164   :  { %893 = vst [vmem:[%s1579_s1 + $0x270] sm:$0xff] %v892_v6  ;;  %895 = vst [vmem:[%s1579_s1 + $0x278] sm:$0xff] %v894_v8  ;;  %v898_v10 = vld [vmem:[#allocation5 + $0x288] sm:$0xff]  ;;  %v900_v11 = vld [vmem:[#allocation5 + $0x290] sm:$0xff] }
 0x165   :  { %897 = vst [vmem:[%s1579_s1 + $0x280] sm:$0xff] %v896_v9  ;;  %v902_v12 = vld [vmem:[#allocation5 + $0x298] sm:$0xff]  ;;  %899 = vst [vmem:[%s1579_s1 + $0x288] sm:$0xff] %v898_v10  ;;  %v904_v13 = vld [vmem:[#allocation5 + $0x2a0] sm:$0xff] }
 0x166   :  { %901 = vst [vmem:[%s1579_s1 + $0x290] sm:$0xff] %v900_v11  ;;  %903 = vst [vmem:[%s1579_s1 + $0x298] sm:$0xff] %v902_v12  ;;  %v906_v14 = vld [vmem:[#allocation5 + $0x2a8] sm:$0xff]  ;;  %v908_v15 = vld [vmem:[#allocation5 + $0x2b0] sm:$0xff] }
 0x167   :  { %905 = vst [vmem:[%s1579_s1 + $0x2a0] sm:$0xff] %v904_v13  ;;  %907 = vst [vmem:[%s1579_s1 + $0x2a8] sm:$0xff] %v906_v14  ;;  %v910_v16 = vld [vmem:[#allocation5 + $0x2b8] sm:$0xff]  ;;  %v912_v17 = vld [vmem:[#allocation5 + $0x2c0] sm:$0xff] }
 0x168   :  { %909 = vst [vmem:[%s1579_s1 + $0x2b0] sm:$0xff] %v908_v15  ;;  %v914_v18 = vld [vmem:[#allocation5 + $0x2c8] sm:$0xff]  ;;  %911 = vst [vmem:[%s1579_s1 + $0x2b8] sm:$0xff] %v910_v16  ;;  %v916_v19 = vld [vmem:[#allocation5 + $0x2d0] sm:$0xff] }
 0x169   :  { %913 = vst [vmem:[%s1579_s1 + $0x2c0] sm:$0xff] %v912_v17  ;;  %915 = vst [vmem:[%s1579_s1 + $0x2c8] sm:$0xff] %v914_v18  ;;  %v918_v20 = vld [vmem:[#allocation5 + $0x2d8] sm:$0xff]  ;;  %v920_v21 = vld [vmem:[#allocation5 + $0x2e0] sm:$0xff] }
 0x16a   :  { %917 = vst [vmem:[%s1579_s1 + $0x2d0] sm:$0xff] %v916_v19  ;;  %919 = vst [vmem:[%s1579_s1 + $0x2d8] sm:$0xff] %v918_v20  ;;  %v922_v22 = vld [vmem:[#allocation5 + $0x2e8] sm:$0xff]  ;;  %v924_v23 = vld [vmem:[#allocation5 + $0x2f0] sm:$0xff] }
 0x16b   :  { %921 = vst [vmem:[%s1579_s1 + $0x2e0] sm:$0xff] %v920_v21  ;;  %v926_v24 = vld [vmem:[#allocation5 + $0x2f8] sm:$0xff]  ;;  %923 = vst [vmem:[%s1579_s1 + $0x2e8] sm:$0xff] %v922_v22  ;;  %v928_v25 = vld [vmem:[#allocation5 + $0x300] sm:$0xff] }
 0x16c   :  { %925 = vst [vmem:[%s1579_s1 + $0x2f0] sm:$0xff] %v924_v23  ;;  %927 = vst [vmem:[%s1579_s1 + $0x2f8] sm:$0xff] %v926_v24  ;;  %v930_v26 = vld [vmem:[#allocation5 + $0x308] sm:$0xff]  ;;  %v932_v27 = vld [vmem:[#allocation5 + $0x310] sm:$0xff] }
 0x16d   :  { %929 = vst [vmem:[%s1579_s1 + $0x300] sm:$0xff] %v928_v25  ;;  %931 = vst [vmem:[%s1579_s1 + $0x308] sm:$0xff] %v930_v26  ;;  %v934_v28 = vld [vmem:[#allocation5 + $0x318] sm:$0xff]  ;;  %v936_v29 = vld [vmem:[#allocation5 + $0x320] sm:$0xff] }
 0x16e   :  { %933 = vst [vmem:[%s1579_s1 + $0x310] sm:$0xff] %v932_v27  ;;  %v938_v30 = vld [vmem:[#allocation5 + $0x328] sm:$0xff]  ;;  %935 = vst [vmem:[%s1579_s1 + $0x318] sm:$0xff] %v934_v28  ;;  %v940_v7 = vld [vmem:[#allocation5 + $0x330] sm:$0xff] }
 0x16f   :  { %937 = vst [vmem:[%s1579_s1 + $0x320] sm:$0xff] %v936_v29  ;;  %939 = vst [vmem:[%s1579_s1 + $0x328] sm:$0xff] %v938_v30  ;;  %v942_v31 = vld [vmem:[#allocation5 + $0x338] sm:$0xff]  ;;  %v944_v32 = vld [vmem:[#allocation5 + $0x340] sm:$0xff] }
 0x170   :  { %941 = vst [vmem:[%s1579_s1 + $0x330] sm:$0xff] %v940_v7  ;;  %943 = vst [vmem:[%s1579_s1 + $0x338] sm:$0xff] %v942_v31  ;;  %v946_v33 = vld [vmem:[#allocation5 + $0x348] sm:$0xff]  ;;  %v948_v34 = vld [vmem:[#allocation5 + $0x350] sm:$0xff] }
 0x171   :  { %945 = vst [vmem:[%s1579_s1 + $0x340] sm:$0xff] %v944_v32  ;;  %v950_v35 = vld [vmem:[#allocation5 + $0x358] sm:$0xff]  ;;  %947 = vst [vmem:[%s1579_s1 + $0x348] sm:$0xff] %v946_v33  ;;  %v952_v36 = vld [vmem:[#allocation5 + $0x360] sm:$0xff] }
 0x172   :  { %949 = vst [vmem:[%s1579_s1 + $0x350] sm:$0xff] %v948_v34  ;;  %951 = vst [vmem:[%s1579_s1 + $0x358] sm:$0xff] %v950_v35  ;;  %v954_v37 = vld [vmem:[#allocation5 + $0x368] sm:$0xff]  ;;  %v956_v38 = vld [vmem:[#allocation5 + $0x370] sm:$0xff] }
 0x173   :  { %953 = vst [vmem:[%s1579_s1 + $0x360] sm:$0xff] %v952_v36  ;;  %955 = vst [vmem:[%s1579_s1 + $0x368] sm:$0xff] %v954_v37  ;;  %v958_v39 = vld [vmem:[#allocation5 + $0x378] sm:$0xff]  ;;  %v960_v40 = vld [vmem:[#allocation5 + $0x380] sm:$0xff] }
 0x174   :  { %957 = vst [vmem:[%s1579_s1 + $0x370] sm:$0xff] %v956_v38  ;;  %v962_v41 = vld [vmem:[#allocation5 + $0x388] sm:$0xff]  ;;  %959 = vst [vmem:[%s1579_s1 + $0x378] sm:$0xff] %v958_v39  ;;  %v964_v42 = vld [vmem:[#allocation5 + $0x390] sm:$0xff] }
 0x175   :  { %961 = vst [vmem:[%s1579_s1 + $0x380] sm:$0xff] %v960_v40  ;;  %963 = vst [vmem:[%s1579_s1 + $0x388] sm:$0xff] %v962_v41  ;;  %v966_v43 = vld [vmem:[#allocation5 + $0x398] sm:$0xff]  ;;  %v968_v44 = vld [vmem:[#allocation5 + $0x3a0] sm:$0xff] }
 0x176   :  { %965 = vst [vmem:[%s1579_s1 + $0x390] sm:$0xff] %v964_v42  ;;  %967 = vst [vmem:[%s1579_s1 + $0x398] sm:$0xff] %v966_v43  ;;  %v970_v45 = vld [vmem:[#allocation5 + $0x3a8] sm:$0xff]  ;;  %v972_v46 = vld [vmem:[#allocation5 + $0x3b0] sm:$0xff] }
 0x177   :  { %969 = vst [vmem:[%s1579_s1 + $0x3a0] sm:$0xff] %v968_v44  ;;  %v974_v47 = vld [vmem:[#allocation5 + $0x3b8] sm:$0xff]  ;;  %971 = vst [vmem:[%s1579_s1 + $0x3a8] sm:$0xff] %v970_v45  ;;  %v976_v2 = vld [vmem:[#allocation5 + $0x3c0] sm:$0xff] }
 0x178   :  { %973 = vst [vmem:[%s1579_s1 + $0x3b0] sm:$0xff] %v972_v46  ;;  %975 = vst [vmem:[%s1579_s1 + $0x3b8] sm:$0xff] %v974_v47  ;;  %v978_v48 = vld [vmem:[#allocation5 + $0x3c8] sm:$0xff]  ;;  %v980_v49 = vld [vmem:[#allocation5 + $0x3d0] sm:$0xff] }
 0x179   :  { %977 = vst [vmem:[%s1579_s1 + $0x3c0] sm:$0xff] %v976_v2  ;;  %979 = vst [vmem:[%s1579_s1 + $0x3c8] sm:$0xff] %v978_v48  ;;  %v982_v50 = vld [vmem:[#allocation5 + $0x3d8] sm:$0xff]  ;;  %v984_v51 = vld [vmem:[#allocation5 + $0x3e0] sm:$0xff] }
 0x17a   :  { %981 = vst [vmem:[%s1579_s1 + $0x3d0] sm:$0xff] %v980_v49  ;;  %983 = vst [vmem:[%s1579_s1 + $0x3d8] sm:$0xff] %v982_v50 }
 0x17b   :  { %985 = vst [vmem:[%s1579_s1 + $0x3e0] sm:$0xff] %v984_v51 }
 0x17c   :  { %991 = vsyncpa [#allocation4], 1 }

</bundles_post_ra>
